<compile_context>
chip_gen: v7x
topology: tpu7x:2x2x1
jax: 0.10.0
libtpu: 0.0.40
codegen_flags: <defaults>
</compile_context>

<pallas_src>
import jax
import jax.numpy as jnp
from jax import lax
from jax.experimental import pallas as pl
from jax.experimental.pallas import tpu as pltpu


def _make_kernel(S, H, E, n_s):
    inv_s = 1.0 / float(S)

    def kernel(x_ref, y_ref, w1t_ref, b1_ref, wcomb_ref, be_ref, out_ref, sent_ref):
        # x_ref    : (TILE_S, Hp)           streamed token tile (one batch row per tile)
        # y_ref    : (B,)            i32    labels (SMEM)
        # w1t_ref  : (Hp, Hp)               linear1 weight, (in, out), zero-padded
        # b1_ref   : (1, Hp)         f32
        # wcomb_ref: (Hp, E*Hp+Gp)          [expert weights | gate weight], zero-padded
        # be_ref   : (1, E*Hp)       f32    stacked expert biases, zero-padded
        # out_ref  : (1, 1)          f32    scalar loss (SMEM)
        # sent_ref : (B, Hp)         f32    VMEM accumulator of per-batch sequence sums
        b = pl.program_id(0)
        s = pl.program_id(1)
        tile_s, Hp = x_ref.shape
        B = sent_ref.shape[0]
        EHp = E * Hp
        Gp = wcomb_ref.shape[1] - EHp
        wdt = wcomb_ref.dtype
        neg_inf = jnp.float32(-jnp.inf)

        @pl.when((b == 0) & (s == 0))
        def _init():
            sent_ref[...] = jnp.zeros_like(sent_ref)
            out_ref[0, 0] = jnp.float32(0.0)

        x = x_ref[...]                                                    # already wdt

        # ---- Linear 1 ----
        h = jnp.dot(x, w1t_ref[...],
                    preferred_element_type=jnp.float32) + b1_ref[...]     # (TILE, Hp) f32
        h_mm = h.astype(wdt)

        # ---- Fused experts + gate: one lane-filling matmul ----
        full = jnp.dot(h_mm, wcomb_ref[...],
                       preferred_element_type=jnp.float32)                # (TILE, E*Hp+Gp)
        eo = full[:, :EHp] + be_ref[...]                                  # (TILE, E*Hp)
        glog = full[:, EHp:]                                              # (TILE, Gp)

        # ---- Top-1 gate directly from logits (no probs tensor) ----
        lane_e = lax.broadcasted_iota(jnp.int32, glog.shape, 1)
        logits = jnp.where(lane_e < E, glog, neg_inf)                     # mask padded experts
        m = jnp.max(logits, axis=-1, keepdims=True)                       # (TILE, 1)
        denom = jnp.sum(jnp.exp(logits - m), axis=-1, keepdims=True)
        best_p = 1.0 / denom                                              # top-1 softmax prob
        best_e = jnp.min(jnp.where(logits >= m, lane_e, Gp),
                         axis=-1, keepdims=True)                          # first argmax

        # ---- Top-1 combine over lane-aligned expert slices ----
        moe = jnp.zeros_like(h)
        for e in range(E):                                                # E small & static
            sel = jnp.where(best_e == e, best_p, jnp.float32(0.0))        # (TILE, 1)
            moe = moe + sel * eo[:, e * Hp:(e + 1) * Hp]

        hid = h + moe                                                     # (TILE, Hp)

        # ---- Sequence sum: this whole tile belongs to batch row b ----
        tile_sum = jnp.sum(hid, axis=0, keepdims=True)                    # (1, Hp)
        b_onehot = (lax.broadcasted_iota(jnp.int32, (B, 1), 0) == b).astype(jnp.float32)
        sent_ref[...] += b_onehot * tile_sum

        # ---- Cross-entropy tail, once on the very last grid step ----
        @pl.when((b == B - 1) & (s == n_s - 1))
        def _finalize():
            sent = sent_ref[...] * inv_s                                  # (B, Hp)
            lane = lax.broadcasted_iota(jnp.int32, sent.shape, 1)
            sent_m = jnp.where(lane < H, sent, neg_inf)                   # mask padded lanes
            mx = jnp.max(sent_m, axis=-1, keepdims=True)
            lse = jnp.log(jnp.sum(jnp.exp(sent_m - mx), axis=-1,
                                  keepdims=True)) + mx                    # (B, 1)
            lane1 = lax.broadcasted_iota(jnp.int32, (1, sent.shape[1]), 1)
            onehot = jnp.concatenate(
                [(lane1 == y_ref[bi]).astype(jnp.float32) for bi in range(B)], axis=0)
            picked = jnp.sum(sent * onehot, axis=-1, keepdims=True)       # (B, 1)
            out_ref[0, 0] = jnp.sum(lse - picked) * (1.0 / B)

    return kernel


def _round_up(v, m):
    return (v + m - 1) // m * m


def _pick_tile_s(S, max_tile=512):
    """Prefer MXU/lane-friendly seq tiles (512/384/256/128) that divide S, else multiples of 8."""
    for cand in (512, 384, 256, 128):
        if cand <= max_tile and S % cand == 0:
            return cand
    cap = min(S, max_tile)
    cand = cap - (cap % 8)
    while cand >= 8:
        if S % cand == 0:
            return cand
        cand -= 8
    return S  # full-extent block (allowed even if not a multiple of 8)


def simple_moe_loss(x, y, w1, b1, wg, we, be, *, tile_s=None, use_bf16=False):
    """x: (B,S,H) f32, y: (B,) int labels, torch-layout weights (out, in)."""
    B, S, H = x.shape
    E = we.shape[0]
    Hp = _round_up(H, 128)          # lane-pad hidden dim
    Gp = _round_up(E, 128)          # lane-pad the gate logit block
    if tile_s is None:
        tile_s = _pick_tile_s(S)
    assert S % tile_s == 0, (S, tile_s)
    n_s = S // tile_s
    T = B * S

    wdt = jnp.bfloat16 if use_bf16 else jnp.float32

    # Tokens: flattened, lane-padded, cast in the wrapper so the streamed DMA already moves wdt.
    x2d = jnp.zeros((T, Hp), wdt).at[:, :H].set(x.reshape(T, H).astype(wdt))
    y1d = y.astype(jnp.int32)

    # Linear1 (in, out) layout, zero-padded.
    w1t = jnp.zeros((Hp, Hp), wdt).at[:H, :H].set(w1.T.astype(wdt))
    b1r = jnp.zeros((1, Hp), jnp.float32).at[:, :H].set(b1.reshape(1, H).astype(jnp.float32))

    # Fused [stacked expert weights | gate weight] matrix, zero-padded.
    wet = jnp.zeros((Hp, E * Hp), wdt)
    beS = jnp.zeros((1, E * Hp), jnp.float32)
    for e in range(E):
        wet = wet.at[:H, e * Hp:e * Hp + H].set(we[e].T.astype(wdt))
        beS = beS.at[:, e * Hp:e * Hp + H].set(be[e].reshape(1, H).astype(jnp.float32))
    wgt = jnp.zeros((Hp, Gp), wdt).at[:H, :E].set(wg.T.astype(wdt))
    wcomb = jnp.concatenate([wet, wgt], axis=1)                           # (Hp, E*Hp + Gp)

    vmem = pl.BlockSpec(memory_space=pltpu.MemorySpace.VMEM)
    smem = pl.BlockSpec(memory_space=pltpu.MemorySpace.SMEM)

    loss = pl.pallas_call(
        _make_kernel(S, H, E, n_s),
        out_shape=jax.ShapeDtypeStruct((1, 1), jnp.float32),
        grid=(B, n_s),
        in_specs=[
            pl.BlockSpec((tile_s, Hp), lambda b, s: (b * n_s + s, 0)),  # x: streamed tiles
            smem,                                                        # labels
            vmem, vmem, vmem, vmem,                                      # resident weights/biases
        ],
        out_specs=smem,
        scratch_shapes=[pltpu.VMEM((B, Hp), jnp.float32)],
        compiler_params=pltpu.CompilerParams(
            # Both axes "arbitrary": the (B,Hp) accumulator and the in-kernel CE tail are
            # carried across the whole grid.  (See TODO above for the v7x megacore variant.)
            dimension_semantics=("arbitrary", "arbitrary"),
            # Safe on v5e/v6e/v7x at these sizes; re-budget (and stream wcomb) for large H*E.
            vmem_limit_bytes=32 * 1024 * 1024,
        ),
    )(x2d, y1d, w1t, b1r, wcomb, beS)
    return loss[0, 0]


def reference_loss(x, y, w1, b1, wg, we, be):
    """Pure-JAX reference matching the PyTorch forward (f32 matmuls)."""
    hp = lax.Precision.HIGHEST
    h = jnp.einsum('bsh,oh->bso', x, w1, precision=hp) + b1
    logits = jnp.einsum('bsh,eh->bse', h, wg, precision=hp)
    probs = jax.nn.softmax(logits, axis=-1)
    idx = jnp.argmax(probs, axis=-1)
    gate = jnp.max(probs, axis=-1)
    eo_all = jnp.einsum('bsh,eoh->bseo', h, we, precision=hp) + be[None, None, :, :]
    onehot = jax.nn.one_hot(idx, we.shape[0], dtype=jnp.float32)
    moe = jnp.einsum('bse,bseo->bso', onehot * gate[..., None], eo_all, precision=hp)
    hid = h + moe
    sent = hid.mean(axis=1)                                              # (B, H)
    lse = jax.scipy.special.logsumexp(sent, axis=-1)
    picked = jnp.take_along_axis(sent, y[:, None], axis=-1)[:, 0]
    return jnp.mean(lse - picked)


if __name__ == "__main__":
    B, S, H, E = 2, 16, 32, 4

    key = jax.random.PRNGKey(0)
    kx, ky, k1, k2, k3, k4, k5 = jax.random.split(key, 7)
    bound = 1.0 / jnp.sqrt(jnp.float32(H))

    x = jax.random.normal(kx, (B, S, H), dtype=jnp.float32)
    y = jax.random.randint(ky, (B,), 0, H, dtype=jnp.int32)

    w1 = jax.random.uniform(k1, (H, H), jnp.float32, -bound, bound)      # Linear(H,H).weight
    b1 = jax.random.uniform(k2, (H,), jnp.float32, -bound, bound)        # Linear(H,H).bias
    wg = jax.random.uniform(k3, (E, H), jnp.float32, -bound, bound)      # gate weight (no bias)
    we = jax.random.uniform(k4, (E, H, H), jnp.float32, -bound, bound)   # expert weights
    be = jax.random.uniform(k5, (E, H), jnp.float32, -bound, bound)      # expert biases

    # tile_s=8 forces a (2,2) grid at toy sizes so the cross-tile accumulator + CE tail paths run.
    loss = jax.block_until_ready(simple_moe_loss(x, y, w1, b1, wg, we, be, tile_s=8))
    ref = jax.block_until_ready(reference_loss(x, y, w1, b1, wg, we, be))

    assert jnp.allclose(loss, ref, rtol=5e-5, atol=5e-5), (loss, ref)
    print("KERNEL_OK")
</pallas_src>

<mosaic_0001>
module attributes {stable_mosaic.version = 11 : i64} {
  func.func @kernel(%arg0: i32, %arg1: i32, %arg2: memref<8x128xf32, #tpu.memory_space<vmem>>, %arg3: memref<2xi32, #tpu.memory_space<smem>>, %arg4: memref<128x128xf32, #tpu.memory_space<vmem>>, %arg5: memref<1x128xf32, #tpu.memory_space<vmem>>, %arg6: memref<128x640xf32, #tpu.memory_space<vmem>>, %arg7: memref<1x512xf32, #tpu.memory_space<vmem>>, %arg8: memref<1x1xf32, #tpu.memory_space<smem>>, %arg9: memref<2x128xf32, #tpu.memory_space<vmem>>) attributes {dimension_semantics = [#tpu.dimension_semantics<arbitrary>, #tpu.dimension_semantics<arbitrary>], iteration_bounds = array<i64: 2, 2>, scalar_prefetch = 0 : i64, scratch_operands = 1 : i64, tpu.core_type = #tpu.core_type<tc>, window_params = [{transform_indices = @transform_0, window_bounds = array<i64: 8, 128>}, {transform_indices = @transform_1, window_bounds = array<i64: 2>}, {pipeline_mode = #tpu.pipeline_mode<synchronous>, transform_indices = @transform_2, window_bounds = array<i64: 128, 128>}, {pipeline_mode = #tpu.pipeline_mode<synchronous>, transform_indices = @transform_3, window_bounds = array<i64: 1, 128>}, {pipeline_mode = #tpu.pipeline_mode<synchronous>, transform_indices = @transform_4, window_bounds = array<i64: 128, 640>}, {pipeline_mode = #tpu.pipeline_mode<synchronous>, transform_indices = @transform_5, window_bounds = array<i64: 1, 512>}, {transform_indices = @transform_6, window_bounds = array<i64: 1, 1>}]} {
    %c0_i32 = arith.constant 0 : i32
    %0 = arith.cmpi eq, %arg0, %c0_i32 : i32
    %c0_i32_0 = arith.constant 0 : i32
    %1 = arith.cmpi eq, %arg1, %c0_i32_0 : i32
    %2 = arith.andi %0, %1 : i1
    %3 = arith.extui %2 : i1 to i32
    %c0_i32_1 = arith.constant 0 : i32
    %4 = arith.cmpi ne, %3, %c0_i32_1 : i32
    scf.if %4 {
      %cst_32 = arith.constant 0.000000e+00 : f32
      %90 = vector.broadcast %cst_32 : f32 to vector<2x128xf32>
      %c0_33 = arith.constant 0 : index
      %c0_34 = arith.constant 0 : index
      %91 = vector.load %arg9[%c0_33, %c0_34] : memref<2x128xf32, #tpu.memory_space<vmem>>, vector<2x128xf32>
      tpu.vector_store %arg9[%c0_33, %c0_34], %90 {strides = array<i32>} : memref<2x128xf32, #tpu.memory_space<vmem>>, vector<2x128xf32>,
      %cst_35 = arith.constant 0.000000e+00 : f32
      %c0_36 = arith.constant 0 : index
      %c0_37 = arith.constant 0 : index
      %92 = memref.load %arg8[%c0_36, %c0_37] : memref<1x1xf32, #tpu.memory_space<smem>>
      memref.store %cst_35, %arg8[%c0_36, %c0_37] : memref<1x1xf32, #tpu.memory_space<smem>>
    } else {
    }
    %c0 = arith.constant 0 : index
    %c0_2 = arith.constant 0 : index
    %5 = vector.load %arg2[%c0, %c0_2] : memref<8x128xf32, #tpu.memory_space<vmem>>, vector<8x128xf32>
    %c0_3 = arith.constant 0 : index
    %c0_4 = arith.constant 0 : index
    %6 = vector.load %arg4[%c0_3, %c0_4] : memref<128x128xf32, #tpu.memory_space<vmem>>, vector<128x128xf32>
    %cst = arith.constant dense<0.000000e+00> : vector<8x128xf32>
    %7 = tpu.matmul %5, %6, %cst {dimension_numbers = #tpu.dot_dimension_numbers<[1], [0], [0], [1], [0, 0, 1, 1], [], []>} : vector<8x128xf32>, vector<128x128xf32>, vector<8x128xf32> -> vector<8x128xf32>
    %c0_5 = arith.constant 0 : index
    %c0_6 = arith.constant 0 : index
    %8 = vector.load %arg5[%c0_5, %c0_6] : memref<1x128xf32, #tpu.memory_space<vmem>>, vector<1x128xf32>
    %9 = vector.broadcast %8 : vector<1x128xf32> to vector<8x128xf32>
    %10 = arith.addf %7, %9 : vector<8x128xf32>
    %c0_7 = arith.constant 0 : index
    %c0_8 = arith.constant 0 : index
    %11 = vector.load %arg6[%c0_7, %c0_8] : memref<128x640xf32, #tpu.memory_space<vmem>>, vector<128x640xf32>
    %cst_9 = arith.constant dense<0.000000e+00> : vector<8x640xf32>
    %12 = tpu.matmul %10, %11, %cst_9 {dimension_numbers = #tpu.dot_dimension_numbers<[1], [0], [0], [1], [0, 0, 1, 1], [], []>} : vector<8x128xf32>, vector<128x640xf32>, vector<8x640xf32> -> vector<8x640xf32>
    %13 = vector.extract_strided_slice %12 {offsets = [0, 0], sizes = [8, 512], strides = [1, 1]} : vector<8x640xf32> to vector<8x512xf32>
    %c0_10 = arith.constant 0 : index
    %c0_11 = arith.constant 0 : index
    %14 = vector.load %arg7[%c0_10, %c0_11] : memref<1x512xf32, #tpu.memory_space<vmem>>, vector<1x512xf32>
    %15 = vector.broadcast %14 : vector<1x512xf32> to vector<8x512xf32>
    %16 = arith.addf %13, %15 : vector<8x512xf32>
    %17 = vector.extract_strided_slice %12 {offsets = [0, 512], sizes = [8, 128], strides = [1, 1]} : vector<8x640xf32> to vector<8x128xf32>
    %18 = tpu.iota {dimensions = array<i32: 1>} : vector<8x128xi32>
    %c4_i32 = arith.constant 4 : i32
    %19 = vector.broadcast %c4_i32 : i32 to vector<8x128xi32>
    %20 = arith.cmpi slt, %18, %19 : vector<8x128xi32>
    %cst_12 = arith.constant 0xFF800000 : f32
    %21 = vector.broadcast %cst_12 : f32 to vector<8x128xf32>
    %22 = arith.select %20, %17, %21 : vector<8x128xi1>, vector<8x128xf32>
    %cst_13 = arith.constant dense<0xFF800000> : vector<8xf32>
    %23 = vector.multi_reduction <maximumf>, %22, %cst_13 [1] : vector<8x128xf32> to vector<8xf32>
    %24 = vector.shape_cast %23 : vector<8xf32> to vector<8x1xf32>
    %25 = vector.broadcast %24 : vector<8x1xf32> to vector<8x128xf32>
    %26 = arith.subf %22, %25 : vector<8x128xf32>
    %27 = math.exp %26 : vector<8x128xf32>
    %cst_14 = arith.constant dense<0.000000e+00> : vector<8xf32>
    %28 = vector.multi_reduction <add>, %27, %cst_14 [1] : vector<8x128xf32> to vector<8xf32>
    %29 = vector.shape_cast %28 : vector<8xf32> to vector<8x1xf32>
    %cst_15 = arith.constant 1.000000e+00 : f32
    %30 = vector.broadcast %cst_15 : f32 to vector<8x1xf32>
    %31 = arith.divf %30, %29 : vector<8x1xf32>
    %32 = vector.broadcast %24 : vector<8x1xf32> to vector<8x128xf32>
    %33 = arith.cmpf oge, %22, %32 : vector<8x128xf32>
    %c128_i32 = arith.constant 128 : i32
    %34 = vector.broadcast %c128_i32 : i32 to vector<8x128xi32>
    %35 = arith.select %33, %18, %34 : vector<8x128xi1>, vector<8x128xi32>
    %cst_16 = arith.constant dense<2147483647> : vector<8xi32>
    %36 = vector.multi_reduction <minsi>, %35, %cst_16 [1] : vector<8x128xi32> to vector<8xi32>
    %37 = vector.shape_cast %36 : vector<8xi32> to vector<8x1xi32>
    %cst_17 = arith.constant 0.000000e+00 : f32
    %38 = vector.broadcast %cst_17 : f32 to vector<8x128xf32>
    %c0_i32_18 = arith.constant 0 : i32
    %39 = vector.broadcast %c0_i32_18 : i32 to vector<8x1xi32>
    %40 = arith.cmpi eq, %37, %39 : vector<8x1xi32>
    %cst_19 = arith.constant 0.000000e+00 : f32
    %41 = vector.broadcast %cst_19 : f32 to vector<8x1xf32>
    %42 = arith.select %40, %31, %41 : vector<8x1xi1>, vector<8x1xf32>
    %43 = vector.extract_strided_slice %16 {offsets = [0, 0], sizes = [8, 128], strides = [1, 1]} : vector<8x512xf32> to vector<8x128xf32>
    %44 = vector.broadcast %42 : vector<8x1xf32> to vector<8x128xf32>
    %45 = arith.mulf %44, %43 : vector<8x128xf32>
    %46 = arith.addf %38, %45 : vector<8x128xf32>
    %c1_i32 = arith.constant 1 : i32
    %47 = vector.broadcast %c1_i32 : i32 to vector<8x1xi32>
    %48 = arith.cmpi eq, %37, %47 : vector<8x1xi32>
    %cst_20 = arith.constant 0.000000e+00 : f32
    %49 = vector.broadcast %cst_20 : f32 to vector<8x1xf32>
    %50 = arith.select %48, %31, %49 : vector<8x1xi1>, vector<8x1xf32>
    %51 = vector.extract_strided_slice %16 {offsets = [0, 128], sizes = [8, 128], strides = [1, 1]} : vector<8x512xf32> to vector<8x128xf32>
    %52 = vector.broadcast %50 : vector<8x1xf32> to vector<8x128xf32>
    %53 = arith.mulf %52, %51 : vector<8x128xf32>
    %54 = arith.addf %46, %53 : vector<8x128xf32>
    %c2_i32 = arith.constant 2 : i32
    %55 = vector.broadcast %c2_i32 : i32 to vector<8x1xi32>
    %56 = arith.cmpi eq, %37, %55 : vector<8x1xi32>
    %cst_21 = arith.constant 0.000000e+00 : f32
    %57 = vector.broadcast %cst_21 : f32 to vector<8x1xf32>
    %58 = arith.select %56, %31, %57 : vector<8x1xi1>, vector<8x1xf32>
    %59 = vector.extract_strided_slice %16 {offsets = [0, 256], sizes = [8, 128], strides = [1, 1]} : vector<8x512xf32> to vector<8x128xf32>
    %60 = vector.broadcast %58 : vector<8x1xf32> to vector<8x128xf32>
    %61 = arith.mulf %60, %59 : vector<8x128xf32>
    %62 = arith.addf %54, %61 : vector<8x128xf32>
    %c3_i32 = arith.constant 3 : i32
    %63 = vector.broadcast %c3_i32 : i32 to vector<8x1xi32>
    %64 = arith.cmpi eq, %37, %63 : vector<8x1xi32>
    %cst_22 = arith.constant 0.000000e+00 : f32
    %65 = vector.broadcast %cst_22 : f32 to vector<8x1xf32>
    %66 = arith.select %64, %31, %65 : vector<8x1xi1>, vector<8x1xf32>
    %67 = vector.extract_strided_slice %16 {offsets = [0, 384], sizes = [8, 128], strides = [1, 1]} : vector<8x512xf32> to vector<8x128xf32>
    %68 = vector.broadcast %66 : vector<8x1xf32> to vector<8x128xf32>
    %69 = arith.mulf %68, %67 : vector<8x128xf32>
    %70 = arith.addf %62, %69 : vector<8x128xf32>
    %71 = arith.addf %10, %70 : vector<8x128xf32>
    %cst_23 = arith.constant dense<0.000000e+00> : vector<128xf32>
    %72 = vector.multi_reduction <add>, %71, %cst_23 [0] : vector<8x128xf32> to vector<128xf32>
    %73 = vector.shape_cast %72 : vector<128xf32> to vector<1x128xf32>
    %74 = tpu.iota {dimensions = array<i32: 0>} : vector<2x1xi32>
    %75 = vector.broadcast %arg0 : i32 to vector<2x1xi32>
    %76 = arith.cmpi eq, %74, %75 : vector<2x1xi32>
    %77 = arith.extui %76 : vector<2x1xi1> to vector<2x1xi32>
    %78 = arith.sitofp %77 : vector<2x1xi32> to vector<2x1xf32>
    %c0_24 = arith.constant 0 : index
    %c0_25 = arith.constant 0 : index
    %79 = vector.load %arg9[%c0_24, %c0_25] : memref<2x128xf32, #tpu.memory_space<vmem>>, vector<2x128xf32>
    %80 = vector.broadcast %78 : vector<2x1xf32> to vector<2x128xf32>
    %81 = vector.broadcast %73 : vector<1x128xf32> to vector<2x128xf32>
    %82 = arith.mulf %80, %81 : vector<2x128xf32>
    %83 = arith.addf %79, %82 : vector<2x128xf32>
    %c0_26 = arith.constant 0 : index
    %c0_27 = arith.constant 0 : index
    %84 = vector.load %arg9[%c0_26, %c0_27] : memref<2x128xf32, #tpu.memory_space<vmem>>, vector<2x128xf32>
    tpu.vector_store %arg9[%c0_26, %c0_27], %83 {strides = array<i32>} : memref<2x128xf32, #tpu.memory_space<vmem>>, vector<2x128xf32>,
    %c1_i32_28 = arith.constant 1 : i32
    %85 = arith.cmpi eq, %arg0, %c1_i32_28 : i32
    %c1_i32_29 = arith.constant 1 : i32
    %86 = arith.cmpi eq, %arg1, %c1_i32_29 : i32
    %87 = arith.andi %85, %86 : i1
    %88 = arith.extui %87 : i1 to i32
    %cst_30 = arith.constant 0xFF800000 : f32
    %c0_i32_31 = arith.constant 0 : i32
    %89 = arith.cmpi ne, %88, %c0_i32_31 : i32
    scf.if %89 {
      %c0_32 = arith.constant 0 : index
      %c0_33 = arith.constant 0 : index
      %90 = vector.load %arg9[%c0_32, %c0_33] : memref<2x128xf32, #tpu.memory_space<vmem>>, vector<2x128xf32>
      %cst_34 = arith.constant 6.250000e-02 : f32
      %91 = vector.broadcast %cst_34 : f32 to vector<2x128xf32>
      %92 = arith.mulf %90, %91 : vector<2x128xf32>
      %93 = tpu.iota {dimensions = array<i32: 1>} : vector<2x128xi32>
      %c32_i32 = arith.constant 32 : i32
      %94 = vector.broadcast %c32_i32 : i32 to vector<2x128xi32>
      %95 = arith.cmpi slt, %93, %94 : vector<2x128xi32>
      %96 = vector.broadcast %cst_30 : f32 to vector<2x128xf32>
      %97 = arith.select %95, %92, %96 : vector<2x128xi1>, vector<2x128xf32>
      %cst_35 = arith.constant dense<0xFF800000> : vector<2xf32>
      %98 = vector.multi_reduction <maximumf>, %97, %cst_35 [1] : vector<2x128xf32> to vector<2xf32>
      %99 = vector.shape_cast %98 : vector<2xf32> to vector<2x1xf32>
      %100 = vector.broadcast %99 : vector<2x1xf32> to vector<2x128xf32>
      %101 = arith.subf %97, %100 : vector<2x128xf32>
      %102 = math.exp %101 : vector<2x128xf32>
      %cst_36 = arith.constant dense<0.000000e+00> : vector<2xf32>
      %103 = vector.multi_reduction <add>, %102, %cst_36 [1] : vector<2x128xf32> to vector<2xf32>
      %104 = vector.shape_cast %103 : vector<2xf32> to vector<2x1xf32>
      %105 = math.log %104 : vector<2x1xf32>
      %106 = arith.addf %105, %99 : vector<2x1xf32>
      %107 = tpu.iota {dimensions = array<i32: 1>} : vector<1x128xi32>
      %c0_37 = arith.constant 0 : index
      %108 = memref.load %arg3[%c0_37] : memref<2xi32, #tpu.memory_space<smem>>
      %109 = vector.broadcast %108 : i32 to vector<1x128xi32>
      %110 = arith.cmpi eq, %107, %109 : vector<1x128xi32>
      %111 = arith.extui %110 : vector<1x128xi1> to vector<1x128xi32>
      %112 = arith.sitofp %111 : vector<1x128xi32> to vector<1x128xf32>
      %c1 = arith.constant 1 : index
      %113 = memref.load %arg3[%c1] : memref<2xi32, #tpu.memory_space<smem>>
      %114 = vector.broadcast %113 : i32 to vector<1x128xi32>
      %115 = arith.cmpi eq, %107, %114 : vector<1x128xi32>
      %116 = arith.extui %115 : vector<1x128xi1> to vector<1x128xi32>
      %117 = arith.sitofp %116 : vector<1x128xi32> to vector<1x128xf32>
      %118 = tpu.concatenate %112, %117 in 0 : vector<1x128xf32>, vector<1x128xf32> -> vector<2x128xf32>
      %119 = arith.mulf %92, %118 : vector<2x128xf32>
      %cst_38 = arith.constant dense<0.000000e+00> : vector<2xf32>
      %120 = vector.multi_reduction <add>, %119, %cst_38 [1] : vector<2x128xf32> to vector<2xf32>
      %121 = vector.shape_cast %120 : vector<2xf32> to vector<2x1xf32>
      %122 = arith.subf %106, %121 : vector<2x1xf32>
      %123 = vector.shape_cast %122 : vector<2x1xf32> to vector<1x2x1xf32>
      %cst_39 = arith.constant dense<0.000000e+00> : vector<1xf32>
      %124 = vector.multi_reduction <add>, %123, %cst_39 [1, 2] : vector<1x2x1xf32> to vector<1xf32>
      %125 = vector.shape_cast %124 : vector<1xf32> to vector<1x1x1xf32>
      %126 = vector.extract %125[0, 0, 0] : f32 from vector<1x1x1xf32>
      %cst_40 = arith.constant 5.000000e-01 : f32
      %127 = arith.mulf %126, %cst_40 : f32
      %c0_41 = arith.constant 0 : index
      %c0_42 = arith.constant 0 : index
      %128 = memref.load %arg8[%c0_41, %c0_42] : memref<1x1xf32, #tpu.memory_space<smem>>
      memref.store %127, %arg8[%c0_41, %c0_42] : memref<1x1xf32, #tpu.memory_space<smem>>
    } else {
    }
    return
  }
  func.func @transform_0(%arg0: i32, %arg1: i32) -> (i32, i32) {
    %c2_i32 = arith.constant 2 : i32
    %0 = arith.muli %arg0, %c2_i32 : i32
    %1 = arith.addi %0, %arg1 : i32
    %c0_i32 = arith.constant 0 : i32
    %c0_i32_0 = arith.constant 0 : i32
    return %1, %c0_i32 : i32, i32
  }
  func.func @transform_1(%arg0: i32, %arg1: i32) -> i32 {
    %c0_i32 = arith.constant 0 : i32
    %c0_i32_0 = arith.constant 0 : i32
    return %c0_i32 : i32
  }
  func.func @transform_2(%arg0: i32, %arg1: i32) -> (i32, i32) {
    %c0_i32 = arith.constant 0 : i32
    %c0_i32_0 = arith.constant 0 : i32
    %c0_i32_1 = arith.constant 0 : i32
    return %c0_i32, %c0_i32_0 : i32, i32
  }
  func.func @transform_3(%arg0: i32, %arg1: i32) -> (i32, i32) {
    %c0_i32 = arith.constant 0 : i32
    %c0_i32_0 = arith.constant 0 : i32
    %c0_i32_1 = arith.constant 0 : i32
    return %c0_i32, %c0_i32_0 : i32, i32
  }
  func.func @transform_4(%arg0: i32, %arg1: i32) -> (i32, i32) {
    %c0_i32 = arith.constant 0 : i32
    %c0_i32_0 = arith.constant 0 : i32
    %c0_i32_1 = arith.constant 0 : i32
    return %c0_i32, %c0_i32_0 : i32, i32
  }
  func.func @transform_5(%arg0: i32, %arg1: i32) -> (i32, i32) {
    %c0_i32 = arith.constant 0 : i32
    %c0_i32_0 = arith.constant 0 : i32
    %c0_i32_1 = arith.constant 0 : i32
    return %c0_i32, %c0_i32_0 : i32, i32
  }
  func.func @transform_6(%arg0: i32, %arg1: i32) -> (i32, i32) {
    %c0_i32 = arith.constant 0 : i32
    %c0_i32_0 = arith.constant 0 : i32
    %c0_i32_1 = arith.constant 0 : i32
    return %c0_i32, %c0_i32_0 : i32, i32
  }
}

</mosaic_0001>

<bundles_post_ra>
// kernel: tpu_custom_call.1
= control target key start
LH: loop header
LB: loop body
LE: loop exit
PB: predicated region body
PF: predicated region fallthrough
CT: control target
= control target key end

     0   :  { %s1863_s0 = inlined_call_operand.hbm [shape: f32[32,128], index: 0, kind: input, shape index: {}]   ;;  %s1864_s1 = inlined_call_operand.vmem [shape: s32[2], index: 1, kind: input, shape index: {}]   ;;  %s1865_s2 = inlined_call_operand.hbm [shape: f32[128,128], index: 2, kind: input, shape index: {}]   ;;  %s1866_s3 = inlined_call_operand.vmem [shape: f32[1,128], index: 3, kind: input, shape index: {}]   ;;  %s1867_s4 = inlined_call_operand.hbm [shape: f32[128,640], index: 4, kind: input, shape index: {}]   ;;  %s1868_s5 = inlined_call_operand.vmem [shape: f32[1,512], index: 5, kind: input, shape index: {}]   ;;  %s1869_s6 = inlined_call_operand.hbm [shape: f32[1,1], index: 6, kind: output, shape index: {}]  }
   0x1   :  { %1875 = sst [smem:[#allocation16_spill]] %s1864_s1 }
   0x2   :  { %1876 = sst [smem:[#allocation17_spill]] %s1865_s2 }
   0x3   :  { %11 = vsyncpa [#allocation4], 0 }
   0x4   :  { %13 = vsyncpa [#allocation4 + $0x1], 0 }
   0x5   :  { %14 = vsyncpa [#allocation6], 0 }
   0x6   :  { %15 = vsyncpa [#allocation9], 0 }
   0x7   :  { %16 = vsyncpa [#allocation5], 0  ;;  %s1569_s21 = smov 0   ;;  %s1571_s22 = smov 0  }
   0x8   :  { %s1573_s23 = smov 0   ;;  %s1575_s24 = smov 0  }
   0x9   :  { %s1577_s25 = smov 0   ;;  %s1579_s26 = smov 0  }
   0xa   :  { %s1581_s27 = smov 0   ;;  %s1583_s28 = smov 0  }
   0xb LB: > { %s1874_s29 = sadd.s32 4294967295, %s1517_s28   ;;  %p58_p0 = scmp.ne.s32.totalorder %s1493_s22, %s1489_s21  ;;  %s1517_s28 = sphi %s1583_s28, %s22_s28   ;;  %s1513_s27 = sphi %s1581_s27, %s1896_s27   ;;  %s1509_s26 = sphi %s1579_s26, %s1895_s26   ;;  %s1505_s25 = sphi %s1577_s25, %s1894_s25   ;;  %s1501_s24 = sphi %s1575_s24, %s1893_s24   ;;  %s1497_s23 = sphi %s1573_s23, %s1892_s23   ;;  %s1493_s22 = sphi %s1571_s22, %s1891_s22   ;;  %s1489_s21 = sphi %s1569_s21, %s1890_s21  }
   0xc   : > { %p1611_p1 = scmp.eq.s32.totalorder %s1874_s29, 0  ;;  %p959_p2 = scmp.ge.s32.totalorder %s1517_s28, 1 }
   0xd   : > { %p195_p3 = scmp.lt.s32.totalorder %s1517_s28, 5  ;;  %s1519_s9 = smov [#allocation8]  }
   0xe   : > { %s1877_s30 = scalar_select %p1611_p1, 1, 0 }
   0xf   : > { %p1619_p4 = por %p1611_p1, %p58_p0  ;;  %p1623_p5 = pnand %p959_p2, %p195_p3 }
  0x10   : > { %s218_s10 = sshll.u32 %s1519_s9, 4  ;;  %s1881_s1 = sld [smem:[#allocation16_spill]]  ;;  %s219_s10 = int_to_ptr.vmem [resolvable:$true] %s218_s10 }
  0x11   : > { %s1878_s7 = scalar_select %p1619_p4, 1, 0 }
  0x12   : > { %s1879_s8 = scalar_select %p1623_p5, 1, 0 }
  0x13   : > { %p1217_p6 = pneg %p1623_p5  ;;  %s1882_s2 = sld [smem:[#allocation17_spill]] }
  0x15   : > { %p1631_p7 = pnand %p1217_p6, %p1611_p1 }
  0x16   : > { %s208_s14 = sshll.u32 %s1881_s1, 4  ;;  %s209_s14 = int_to_ptr.vmem [resolvable:$true] %s208_s14 }
  0x17   : > { %p1646_p9 = pneg %p1631_p7 }
  0x19   : > { %s1326_s17 = scalar_lea.hbm %s1882_s2, 2048 }
  0x1a   : > { %p1327_p8 = scmp.ne.s32.totalorder %s1882_s2, %s1326_s17  ;;  %p1333_p12 = scmp.lt.u32.totalorder %s1326_s17, %s1882_s2 }
  0x1c   : > { %p1329_p10 = pnand %p1646_p9, %p1327_p8 }
  0x1e   : > { %p1330_p11 = pneg %p1329_p10 }
  0x20   : > { %p1335_p13 = pnand %p1333_p12, %p1330_p11 }
  0x22   : > { %1338 = shalt.err (!%p1335_p13)
}
  0x23   : > { %s1339_s12 = scalar_lea.vmem %s219_s10, 2048  ;;  %p1347_p6 = scmp.lt.s32.totalorder %s219_s10, %s219_s10 }
  0x24   : > { %p1340_p0 = scmp.ne.s32.totalorder %s219_s10, %s1339_s12  ;;  %p1348_p1 = scmp.lt.s32.totalorder %s1339_s12, %s1339_s12 }
  0x26   : > { %p1342_p2 = pnand %p1340_p0, %p1646_p9  ;;  %p1349_p4 = por %p1348_p1, %p1347_p6 }
  0x28   : > { %p1343_p3 = pneg %p1342_p2 }
  0x2a   : > { %p1350_p5 = pnand %p1349_p4, %p1343_p3 }
  0x2c   : > { %1353 = shalt.err (!%p1350_p5)
}
  0x2d   : > { %s1520_s13 = smov 128   ;;  %s1521_s15 = smov 8  }
  0x2e   : > { %1223 = dma.hbm_to_vmem [thread:$0]  (!%p1631_p7), %s1882_s2, 2048, %s219_s10, [#allocation9], %s1520_s13, %s1520_s13, %s1521_s15  }
  0x2f   : > { %s1354_s18 = scalar_lea.vmem %s209_s14, 16  ;;  %p1362_p12 = scmp.lt.s32.totalorder %s209_s14, %s209_s14 }
  0x30   : > { %p1355_p8 = scmp.ne.s32.totalorder %s209_s14, %s1354_s18  ;;  %p1363_p13 = scmp.lt.s32.totalorder %s1354_s18, %s1354_s18 }
  0x32   : > { %p1357_p10 = pnand %p1355_p8, %p1646_p9  ;;  %p1364_p1 = por %p1363_p13, %p1362_p12 }
  0x34   : > { %p1358_p11 = pneg %p1357_p10 }
  0x36   : > { %p1365_p4 = pnand %p1364_p1, %p1358_p11 }
  0x38   : > { %1368 = shalt.err (!%p1365_p4)
}
  0x39   : > { %s1522_s19 = smov [#allocation7]   ;;  %s1523_s21 = smov [#allocation10]  }
  0x3a   : > { %1220 = dma.vmem_to_smem (!%p1631_p7), %s209_s14, 16, %s1522_s19, [#allocation6]  }
  0x3b   : > { %s234_s9 = sshll.u32 %s1523_s21, 4  ;;  %s1369_s13 = scalar_lea.hbm %s1867_s4, 10240  ;;  %s235_s9 = int_to_ptr.vmem [resolvable:$true] %s234_s9 }
  0x3c   : > { %p1370_p5 = scmp.ne.s32.totalorder %s1867_s4, %s1369_s13  ;;  %p1376_p3 = scmp.lt.u32.totalorder %s1369_s13, %s1867_s4 }
  0x3e   : > { %p1372_p0 = pnand %p1370_p5, %p1646_p9 }
  0x40   : > { %p1373_p2 = pneg %p1372_p0 }
  0x42   : > { %p1378_p6 = pnand %p1376_p3, %p1373_p2 }
  0x44   : > { %1381 = shalt.err (!%p1378_p6)
}
  0x45   : > { %s1382_s14 = scalar_lea.vmem %s235_s9, 10240  ;;  %p1390_p12 = scmp.lt.s32.totalorder %s235_s9, %s235_s9 }
  0x46   : > { %p1383_p8 = scmp.ne.s32.totalorder %s235_s9, %s1382_s14  ;;  %p1391_p13 = scmp.lt.s32.totalorder %s1382_s14, %s1382_s14 }
  0x48   : > { %p1385_p10 = pnand %p1383_p8, %p1646_p9  ;;  %p1392_p1 = por %p1391_p13, %p1390_p12 }
  0x4a   : > { %p1386_p11 = pneg %p1385_p10 }
  0x4c   : > { %p1393_p4 = pnand %p1392_p1, %p1386_p11 }
  0x4e   : > { %1396 = shalt.err (!%p1393_p4)
}
  0x4f   : > { %s1524_s19 = smov 640   ;;  %s1525_s20 = smov 40  }
  0x50   : > { %1226 = dma.hbm_to_vmem [thread:$0]  (!%p1631_p7), %s1867_s4, 10240, %s235_s9, [#allocation9], %s1524_s19, %s1524_s19, %s1525_s20  }
  0x51   : > { %s31_s12 = sadd.s32 1, %s1509_s26  ;;  %s34_s13 = sadd.s32 1, %s1513_s27 }
  0x52   : > { %p32_p9 = scmp.ge.s32.totalorder %s31_s12, 2  ;;  %s957_s15 = sshll.u32 %s1513_s27, 1 }
  0x53   : > { %s45_s16 = sadd.s32 1, %s1497_s23  ;;  %s39_s17 = sadd.s32 %s1509_s26, %s957_s15 }
  0x54   : > { %s1898_s12 = smov (%p32_p9, %s31_s12), 0  ;;  %s1900_s13 = smov (!%p32_p9, %s34_s13), %s1513_s27 }
  0x55   : > { %p52_p5 = scmp.ne.s32.totalorder %s1497_s23, %s1493_s22  ;;  %p36_p0 = scmp.ge.s32.totalorder %s1900_s13, 2 }
  0x56   : > { %p53_p2 = scmp.eq.s32.totalorder %s1517_s28, 0  ;;  %p1234_p3 = scmp.lt.s32.totalorder %s1517_s28, 4 }
  0x57   : > { %s251_s11 = sand.u32 1, %s1497_s23   ;;  %s1902_s13 = smov (%p36_p0, %s1900_s13), 0 }
  0x58   : > { %p54_p7 = por %p53_p2, %p52_p5  ;;  %s958_s9 = sshll.u32 %s1902_s13, 1 }
  0x59   : > { %s964_s18 = sshll.u32 %s251_s11, 3  ;;  %s41_s14 = sadd.s32 %s958_s9, %s1898_s12 }
  0x5a   : > { %s42_s19 = ssub.s32 %s39_s17, %s41_s14  ;;  %s966_s20 = sshll.u32 %s39_s17, 7 }
  0x5b   : > { %p43_p6 = scmp.eq.s32.totalorder %s42_s19, 0  ;;  %s1704_s15 = scalar_lea.hbm %s1863_s0, %s966_s20 }
  0x5c   : > { %s255_s29 = scalar_lea.vmem [#allocation3], %s964_s18  ;;  %p1708_p8 = pnand %p1234_p3, %p54_p7 }
  0x5d   : > { %s264_s1 = sshll.u32 %s255_s29, 4  ;;  %s252_s9 = scalar_lea.sflag [#allocation4], %s251_s11  ;;  %s1715_s1 = int_to_ptr.vmem [resolvable:$true] %s264_s1 }
  0x5e   : > { %s1713_s17 = scalar_select %p43_p6, %s1497_s23, %s45_s16  }
  0x5f   : > { %s1397_s14 = scalar_lea.hbm %s1704_s15, 128  ;;  %p1399_p11 = pneg %p1708_p8 }
  0x60   : > { %p1398_p10 = scmp.ne.s32.totalorder %s1704_s15, %s1397_s14  ;;  %s1402_s19 = scalar_lea.hbm %s1863_s0, 512 }
  0x61   : > { %p1403_p1 = scmp.lt.u32.totalorder %s1704_s15, %s1863_s0  ;;  %p1404_p4 = scmp.lt.u32.totalorder %s1402_s19, %s1397_s14 }
  0x62   : > { %p1400_p12 = pnand %p1399_p11, %p1398_p10  ;;  %p1406_p5 = scmp.lt.u32.totalorder %s1397_s14, %s1704_s15 }
  0x63   : > { %p1405_p9 = por %p1404_p4, %p1403_p1 }
  0x64   : > { %p1401_p13 = pneg %p1400_p12 }
  0x65   : > { %p1407_p0 = por %p1406_p5, %p1405_p9 }
  0x67   : > { %p1408_p2 = pnand %p1407_p0, %p1401_p13 }
  0x69   : > { %1411 = shalt.err (!%p1408_p2)
}
  0x6a   : > { %s1412_s16 = scalar_lea.vmem %s1715_s1, 128  ;;  %s1526_s11 = smov [#allocation3]  }
  0x6b   : > { %p1413_p3 = scmp.ne.s32.totalorder %s1715_s1, %s1412_s16  ;;  %s1417_s10 = sshll.u32 %s1526_s11, 4  ;;  %s1418_s10 = int_to_ptr.vmem [resolvable:$false] %s1417_s10 }
  0x6c   : > { %s1419_s29 = scalar_lea.vmem %s1418_s10, 256  ;;  %p1420_p10 = scmp.lt.s32.totalorder %s1715_s1, %s1418_s10 }
  0x6d   : > { %p1415_p7 = pnand %p1413_p3, %p1399_p11  ;;  %p1421_p12 = scmp.lt.s32.totalorder %s1419_s29, %s1412_s16 }
  0x6f   : > { %p1416_p6 = pneg %p1415_p7  ;;  %p1422_p1 = por %p1421_p12, %p1420_p10 }
  0x71   : > { %p1423_p4 = pnand %p1422_p1, %p1416_p6 }
  0x73   : > { %1426 = shalt.err (!%p1423_p4)
}
  0x74   : > { %1230 = dma.hbm_to_vmem [thread:$0]  (!%p1708_p8), %s1704_s15, 128, %s1715_s1, %s252_s9  }
  0x75   : > { %p1885_p13 = scmp.ne.s32.totalorder %s1879_s8, 0 }
  0x76   : > { %s275_s14 = sand.u32 (!%p1885_p13), 1, %s1493_s22   ;;  %p1886_p11 = scmp.ne.s32.totalorder (!%p1885_p13), %s1878_s7, 0 }
  0x77   : > { %273 = sbr.rel (%p1885_p13) target bundleno = 1656 (0x678), region = 44  ;;  %s1745_s18 = sshll.u32 (!%p1885_p13), %s275_s14, 3 }
  0x78   : > { %s276_s19 = scalar_lea.sflag (!%p1885_p13), [#allocation4], %s275_s14  ;;  %s279_s20 = scalar_lea.vmem (!%p1885_p13), [#allocation3], %s1745_s18 }
  0x7e   : > { %1472 = dma.done.wait (%p1886_p11), %s276_s19, 128  }
  0x7f   : > { %1474 = vsyncadd (%p1886_p11), %s276_s19, 4294967168  ;;  %p1887_p9 = scmp.ne.s32.totalorder %s1877_s30, 0 }
  0x81   : > { %1476 = dma.done.wait (%p1887_p9), [#allocation6], 16  }
  0x82   : > { %1478 = vsyncadd (%p1887_p9), [#allocation6], 4294967280 }
  0x83   : > { %1480 = dma.done.wait (%p1887_p9), [#allocation9], 12288  }
  0x84   : > { %1482 = vsyncadd (%p1887_p9), [#allocation9], 4294955008 }
  0x85   : > { %296 = sfence }
  0x86   : > { %p318_p8 = scmp.eq.s32.totalorder %s1505_s25, 0  ;;  %p319_p5 = scmp.eq.s32.totalorder %s1501_s24, 0 }
  0x88   : > { %p320_p0 = pnand %p319_p5, %p318_p8 }
  0x89   : > { %v1527_v0 = vmov (!%p320_p0), 0.0   ;;  %s1528_s1 = smov (!%p320_p0), 0.0  }
  0x8a   : > { %323 = sbr.rel (%p320_p0) target bundleno = 145 (0x91), region = 64  ;;  %324 = vst [vmem:[#allocation2] sm:$0x3] (!%p320_p0), %v1527_v0  ;;  %326 = sst [smem:[#allocation11]] (!%p320_p0), %s1528_s1 }
  0x91 PF: > { %v328_v1 = vld [vmem:[#allocation8] sm:$0xff]  ;;  %v329_v2 = vld [vmem:[#allocation8 + $0x8] sm:$0xff]  ;;  %v330_v3 = vld [vmem:[#allocation8 + $0x10] sm:$0xff]  ;;  %v1529_v4 = vmov 0.0|0.0   ;;  %vm1530_vm0 = vmmov 0   ;;  %v1531_v7 = vmov 0.0  }
  0x92   : > { %1085 = vmatprep.subr.bf16.mxu0 %v1529_v4  ;;  %v1086_v5 = vpack.c.bf16 %v329_v2, %v328_v1  ;;  %v331_v6 = vld [vmem:[#allocation8 + $0x18] sm:$0xff]  ;;  %1047 = vmatprep.mubr.msk.f32.mxu0 %vm1530_vm0, %v1531_v7  ;;  %v332_v9 = vld [vmem:[#allocation8 + $0x20] sm:$0xff]  ;;  %v333_v10 = vld [vmem:[#allocation8 + $0x28] sm:$0xff]  ;;  %p801_p2 = scmp.eq.s32.totalorder %s1505_s25, 1  ;;  %p802_p3 = scmp.eq.s32.totalorder %s1501_s24, 1 }
  0x93   : > { %565 = vmatprep.mubr.f32.mxu1 %v1531_v7  ;;  %v1089_v8 = vpack.c.bf16 %v331_v6, %v330_v3  ;;  %v422_v11 = vld [vmem:[#allocation10 + $0x8] sm:$0xff]  ;;  %v427_v12 = vld [vmem:[#allocation10 + $0x30] sm:$0xff]  ;;  %v421_v13 = vld [vmem:[#allocation10] sm:$0xff]  ;;  %v1092_v15 = vpack.c.bf16 %v333_v10, %v332_v9 }
  0x94   : > { %1087 = vmatpush3.bf16.msra.mxu0 %v1086_v5  ;;  %v426_v14 = vld [vmem:[#allocation10 + $0x28] sm:$0xff]  ;;  %v334_v16 = vld [vmem:[#allocation8 + $0x30] sm:$0xff]  ;;  %v1109_v17 = vpack.c.bf16 %v427_v12, %v422_v11  ;;  %v335_v19 = vld [vmem:[#allocation8 + $0x38] sm:$0xff]  ;;  %p1809_p7 = pnand %p802_p3, %p801_p2 }
  0x95   : > { %1088 = vmatprep.subr.bf16.mxu0 %v1529_v4  ;;  %v1111_v18 = vpack.c.bf16 %v426_v14, %v421_v13  ;;  %v432_v20 = vld [vmem:[#allocation10 + $0x58] sm:$0xff]  ;;  %v437_v21 = vld [vmem:[#allocation10 + $0x80] sm:$0xff]  ;;  %v431_v23 = vld [vmem:[#allocation10 + $0x50] sm:$0xff]  ;;  %v1095_v26 = vpack.c.bf16 %v335_v19, %v334_v16  ;;  %vm811_vm10 = vcmask (!%p1809_p7), 1041408   ;;  %s824_s24 = sld [smem:[#allocation7]] (!%p1809_p7)  ;;  %vm834_vm11 = vcmask (!%p1809_p7), 1040384  }
  0x96   : > { %1110 = vmatprep.subr.bf16.mxu1 %v1109_v17  ;;  %v1113_v22 = vpack.c.bf16 %v437_v21, %v432_v20  ;;  %v436_v24 = vld [vmem:[#allocation10 + $0x78] sm:$0xff]  ;;  %v442_v27 = vld [vmem:[#allocation10 + $0xa8] sm:$0xff]  ;;  %v447_v28 = vld [vmem:[#allocation10 + $0xd0] sm:$0xff]  ;;  %vm841_vm14 = vcmask (!%p1809_p7), 1024  }
  0x97   : > { %1112 = vmatpush1.bf16.msra.mxu1 %v1111_v18  ;;  %v1115_v25 = vpack.c.bf16 %v436_v24, %v431_v23  ;;  %v441_v29 = vld [vmem:[#allocation10 + $0xa0] sm:$0xff]  ;;  %v337_v31 = vld [vmem:[#allocation8 + $0x48] sm:$0xff]  ;;  %v1117_v32 = vpack.c.bf16 %v447_v28, %v442_v27  ;;  %v452_v34 = vld [vmem:[#allocation10 + $0xf8] sm:$0xff] }
  0x98   : > { %1090 = vmatpush3.bf16.msra.mxu0 %v1089_v8  ;;  %1114 = vmatprep.subr.bf16.mxu1 %v1113_v22  ;;  %v336_v30 = vld [vmem:[#allocation8 + $0x40] sm:$0xff]  ;;  %v446_v33 = vld [vmem:[#allocation10 + $0xc8] sm:$0xff]  ;;  %v338_v38 = vld [vmem:[#allocation8 + $0x50] sm:$0xff] }
  0x99   : > { %1091 = vmatprep.subr.bf16.mxu0 %v1529_v4  ;;  %v1119_v35 = vpack.c.bf16 %v446_v33, %v441_v29  ;;  %v457_v36 = vld [vmem:[#allocation10 + $0x120] sm:$0xff]  ;;  %v1098_v37 = vpack.c.bf16 %v337_v31, %v336_v30  ;;  %v451_v40 = vld [vmem:[#allocation10 + $0xf0] sm:$0xff]  ;;  %v456_v41 = vld [vmem:[#allocation10 + $0x118] sm:$0xff] }
  0x9a   : > { %v1121_v39 = vpack.c.bf16 %v457_v36, %v452_v34  ;;  %v339_v42 = vld [vmem:[#allocation8 + $0x58] sm:$0xff]  ;;  %v462_v43 = vld [vmem:[#allocation10 + $0x148] sm:$0xff]  ;;  %v467_v44 = vld [vmem:[#allocation10 + $0x170] sm:$0xff]  ;;  %v1123_v45 = vpack.c.bf16 %v456_v41, %v451_v40 }
  0x9b   : > { %1116 = vmatpush1.bf16.msra.mxu1 %v1115_v25  ;;  %v1101_v46 = vpack.c.bf16 %v339_v42, %v338_v38  ;;  %v340_v47 = vld [vmem:[#allocation8 + $0x60] sm:$0xff]  ;;  %v1125_v48 = vpack.c.bf16 %v467_v44, %v462_v43  ;;  %v466_v50 = vld [vmem:[#allocation10 + $0x168] sm:$0xff]  ;;  %v472_v52 = vld [vmem:[#allocation10 + $0x198] sm:$0xff] }
  0x9c   : > { %1093 = vmatpush3.bf16.msra.mxu0 %v1092_v15  ;;  %1118 = vmatprep.subr.bf16.mxu1 %v1117_v32  ;;  %v461_v49 = vld [vmem:[#allocation10 + $0x140] sm:$0xff]  ;;  %v341_v51 = vld [vmem:[#allocation8 + $0x68] sm:$0xff]  ;;  %v342_v56 = vld [vmem:[#allocation8 + $0x70] sm:$0xff] }
  0x9d   : > { %1094 = vmatprep.subr.bf16.mxu0 %v1529_v4  ;;  %v477_v53 = vld [vmem:[#allocation10 + $0x1c0] sm:$0xff]  ;;  %v1127_v54 = vpack.c.bf16 %v466_v50, %v461_v49  ;;  %v1104_v55 = vpack.c.bf16 %v341_v51, %v340_v47  ;;  %v471_v58 = vld [vmem:[#allocation10 + $0x190] sm:$0xff]  ;;  %v476_v59 = vld [vmem:[#allocation10 + $0x1b8] sm:$0xff] }
  0x9e   : > { %v1129_v57 = vpack.c.bf16 %v477_v53, %v472_v52  ;;  %v343_v60 = vld [vmem:[#allocation8 + $0x78] sm:$0xff]  ;;  %v482_v61 = vld [vmem:[#allocation10 + $0x1e8] sm:$0xff]  ;;  %v487_v62 = vld [vmem:[#allocation10 + $0x210] sm:$0xff]  ;;  %v1131_v1 = vpack.c.bf16 %v476_v59, %v471_v58 }
  0x9f   : > { %1120 = vmatpush1.bf16.msra.mxu1 %v1119_v35  ;;  %v424_v63 = vld [vmem:[#allocation10 + $0x18] sm:$0xff]  ;;  %v429_v0 = vld [vmem:[#allocation10 + $0x40] sm:$0xff]  ;;  %v1107_v2 = vpack.c.bf16 %v343_v60, %v342_v56  ;;  %v423_v3 = vld [vmem:[#allocation10 + $0x10] sm:$0xff]  ;;  %v1133_v5 = vpack.c.bf16 %v487_v62, %v482_v61 }
  0xa0   : > { %1096 = vmatpush3.bf16.msra.mxu0 %v1095_v26  ;;  %1122 = vmatprep.subr.bf16.mxu1 %v1121_v39  ;;  %v481_v6 = vld [vmem:[#allocation10 + $0x1e0] sm:$0xff]  ;;  %v486_v8 = vld [vmem:[#allocation10 + $0x208] sm:$0xff]  ;;  %v1141_v9 = vpack.c.bf16 %v429_v0, %v424_v63  ;;  %v428_v10 = vld [vmem:[#allocation10 + $0x38] sm:$0xff] }
  0xa1   : > { %1097 = vmatprep.subr.bf16.mxu0 %v1529_v4  ;;  %v492_v11 = vld [vmem:[#allocation10 + $0x238] sm:$0xff]  ;;  %v497_v12 = vld [vmem:[#allocation10 + $0x260] sm:$0xff]  ;;  %v434_v13 = vld [vmem:[#allocation10 + $0x68] sm:$0xff]  ;;  %v1135_v15 = vpack.c.bf16 %v486_v8, %v481_v6  ;;  %v1143_v17 = vpack.c.bf16 %v428_v10, %v423_v3 }
  0xa2   : > { %v439_v14 = vld [vmem:[#allocation10 + $0x90] sm:$0xff]  ;;  %v1137_v18 = vpack.c.bf16 %v497_v12, %v492_v11  ;;  %v496_v20 = vld [vmem:[#allocation10 + $0x258] sm:$0xff]  ;;  %v433_v22 = vld [vmem:[#allocation10 + $0x60] sm:$0xff] }
  0xa3   : > { %1124 = vmatpush1.bf16.msra.mxu1 %v1123_v45  ;;  %v327_v16 = vld [vmem:[%s279_s20] sm:$0xff]  ;;  %v1145_v21 = vpack.c.bf16 %v439_v14, %v434_v13  ;;  %v438_v23 = vld [vmem:[#allocation10 + $0x88] sm:$0xff]  ;;  %v449_v25 = vld [vmem:[#allocation10 + $0xe0] sm:$0xff] }
  0xa4   : > { %1099 = vmatpush3.bf16.msra.mxu0 %v1098_v37  ;;  %1126 = vmatprep.subr.bf16.mxu1 %v1125_v48  ;;  %v491_v19 = vld [vmem:[#allocation10 + $0x230] sm:$0xff]  ;;  %v444_v24 = vld [vmem:[#allocation10 + $0xb8] sm:$0xff]  ;;  %v1147_v27 = vpack.c.bf16 %v438_v23, %v433_v22  ;;  %v454_v31 = vld [vmem:[#allocation10 + $0x108] sm:$0xff] }
  0xa5   : > { %1100 = vmatprep.subr.bf16.mxu0 %v1529_v4  ;;  %v1139_v26 = vpack.c.bf16 %v496_v20, %v491_v19  ;;  %v1149_v28 = vpack.c.bf16 %v449_v25, %v444_v24  ;;  %v443_v29 = vld [vmem:[#allocation10 + $0xb0] sm:$0xff]  ;;  %v448_v30 = vld [vmem:[#allocation10 + $0xd8] sm:$0xff]  ;;  %v453_v35 = vld [vmem:[#allocation10 + $0x100] sm:$0xff] }
  0xa6   : > { %v459_v32 = vld [vmem:[#allocation10 + $0x130] sm:$0xff]  ;;  %v1151_v33 = vpack.c.bf16 %v448_v30, %v443_v29  ;;  %v458_v36 = vld [vmem:[#allocation10 + $0x128] sm:$0xff]  ;;  %v464_v37 = vld [vmem:[#allocation10 + $0x158] sm:$0xff] }
  0xa7   : > { %1128 = vmatpush1.bf16.msra.mxu1 %v1127_v54  ;;  %v1153_v34 = vpack.c.bf16 %v459_v32, %v454_v31  ;;  %v469_v38 = vld [vmem:[#allocation10 + $0x180] sm:$0xff]  ;;  %v1155_v39 = vpack.c.bf16 %v458_v36, %v453_v35  ;;  %v463_v41 = vld [vmem:[#allocation10 + $0x150] sm:$0xff]  ;;  %v468_v42 = vld [vmem:[#allocation10 + $0x178] sm:$0xff] }
  0xa8   : > { %1102 = vmatpush3.bf16.msra.mxu0 %v1101_v46  ;;  %1130 = vmatprep.subr.bf16.mxu1 %v1129_v57  ;;  %v1157_v40 = vpack.c.bf16 %v469_v38, %v464_v37  ;;  %v474_v43 = vld [vmem:[#allocation10 + $0x1a8] sm:$0xff]  ;;  %v479_v44 = vld [vmem:[#allocation10 + $0x1d0] sm:$0xff]  ;;  %v1159_v45 = vpack.c.bf16 %v468_v42, %v463_v41  ;;  %v473_v47 = vld [vmem:[#allocation10 + $0x1a0] sm:$0xff] }
  0xa9   : > { %1103 = vmatprep.subr.bf16.mxu0 %v1529_v4  ;;  %v1161_v46 = vpack.c.bf16 %v479_v44, %v474_v43  ;;  %v478_v48 = vld [vmem:[#allocation10 + $0x1c8] sm:$0xff]  ;;  %v484_v49 = vld [vmem:[#allocation10 + $0x1f8] sm:$0xff]  ;;  %v489_v50 = vld [vmem:[#allocation10 + $0x220] sm:$0xff] }
  0xaa   : > { %v1163_v51 = vpack.c.bf16 %v478_v48, %v473_v47  ;;  %v1165_v52 = vpack.c.bf16 %v489_v50, %v484_v49  ;;  %v483_v53 = vld [vmem:[#allocation10 + $0x1f0] sm:$0xff]  ;;  %v488_v54 = vld [vmem:[#allocation10 + $0x218] sm:$0xff]  ;;  %v493_v59 = vld [vmem:[#allocation10 + $0x240] sm:$0xff] }
  0xab   : > { %1132 = vmatpush1.bf16.msra.mxu1 %v1131_v1  ;;  %v499_v56 = vld [vmem:[#allocation10 + $0x270] sm:$0xff]  ;;  %v1167_v57 = vpack.c.bf16 %v488_v54, %v483_v53  ;;  %v498_v60 = vld [vmem:[#allocation10 + $0x268] sm:$0xff]  ;;  %v425_v62 = vld [vmem:[#allocation10 + $0x20] sm:$0xff] }
  0xac   : > { %1105 = vmatpush3.bf16.msra.mxu0 %v1104_v55  ;;  %1134 = vmatprep.subr.bf16.mxu1 %v1133_v5  ;;  %v494_v55 = vld [vmem:[#allocation10 + $0x248] sm:$0xff]  ;;  %v1171_v61 = vpack.c.bf16 %v498_v60, %v493_v59  ;;  %v435_v6 = vld [vmem:[#allocation10 + $0x70] sm:$0xff]  ;;  %v440_v8 = vld [vmem:[#allocation10 + $0x98] sm:$0xff] }
  0xad   : > { %1106 = vmatprep.subr.bf16.mxu0 %v1529_v4  ;;  %v1169_v58 = vpack.c.bf16 %v499_v56, %v494_v55  ;;  %v430_v63 = vld [vmem:[#allocation10 + $0x48] sm:$0xff]  ;;  %v445_v10 = vld [vmem:[#allocation10 + $0xc0] sm:$0xff]  ;;  %v455_v13 = vld [vmem:[#allocation10 + $0x110] sm:$0xff] }
  0xae   : > { %v972_v0 = vld [vmem:[%s1866_s3] ss:$0 sm:$0xff]  ;;  %v460_v14 = vld [vmem:[#allocation10 + $0x138] sm:$0xff]  ;;  %v475_v19 = vld [vmem:[#allocation10 + $0x1b0] sm:$0xff] }
  0xaf   : > { %1136 = vmatpush1.bf16.msra.mxu1 %v1135_v15  ;;  %v450_v11 = vld [vmem:[#allocation10 + $0xe8] sm:$0xff]  ;;  %v1183_v15 = vpack.c.bf16 %v460_v14, %v455_v13  ;;  %v480_v20 = vld [vmem:[#allocation10 + $0x1d8] sm:$0xff]  ;;  %v485_v22 = vld [vmem:[#allocation10 + $0x200] sm:$0xff] }
  0xb0   : > { %1108 = vmatpush3.bf16.msra.mxu0 %v1107_v2  ;;  %1138 = vmatprep.subr.bf16.mxu1 %v1137_v18  ;;  %v1174_v2 = vpack.c.bf16 %v430_v63, %v425_v62  ;;  %v1180_v12 = vpack.c.bf16 %v450_v11, %v445_v10  ;;  %v490_v23 = vld [vmem:[#allocation10 + $0x228] sm:$0xff]  ;;  %v495_v25 = vld [vmem:[#allocation10 + $0x250] sm:$0xff] }
  0xb1   : > { %1142 = vmatprep.subr.bf16.mxu0 %v1141_v9  ;;  %v1177_v9 = vpack.c.bf16 %v440_v8, %v435_v6  ;;  %v1192_v24 = vpack.c.bf16 %v490_v23, %v485_v22  ;;  %v713_v32 = vld [vmem:[%s1868_s5] sm:$0xf] }
  0xb3   : > { %1048 = vmatmul.mubr.f32.vlgmr.msra.gmra.mrb[0].mxu0 %v327_v16  ;;  %1140 = vmatpush1.bf16.msra.mxu1 %v1139_v26  ;;  %v465_v16 = vld [vmem:[#allocation10 + $0x160] sm:$0xff]  ;;  %v500_v26 = vld [vmem:[#allocation10 + $0x278] sm:$0xff] }
  0xb4   : > { %1144 = vmatpush1.bf16.msra.mxu0 %v1143_v17  ;;  %636 = vmatprep.mubr.f32.mxu0 %v1531_v7  ;;  %v470_v17 = vld [vmem:[#allocation10 + $0x188] sm:$0xff] }
  0xb5   : > { %1146 = vmatprep.subr.bf16.mxu0 %v1145_v21  ;;  %1173 = vmatprep.subr.bf16.mxu1 %v1529_v4  ;;  %v1186_v18 = vpack.c.bf16 %v470_v17, %v465_v16  ;;  %v1189_v21 = vpack.c.bf16 %v480_v20, %v475_v19 }
  0xb8   : > { %1148 = vmatpush1.bf16.msra.mxu0 %v1147_v27  ;;  %v1195_v27 = vpack.c.bf16 %v500_v26, %v495_v25 }
  0xb9   : > { %1150 = vmatprep.subr.bf16.mxu0 %v1149_v28  ;;  %v715_v28 = vlaneseq }
  0xbb   : > { %v1794_v29 = vshrl.u32 %v715_v28, 7 }
  0xbc   : > { %1152 = vmatpush1.bf16.msra.mxu0 %v1151_v33 }
  0xbd   : > { %1154 = vmatprep.subr.bf16.mxu0 %v1153_v34  ;;  %v717_v30 = vsub.s32 0, %v1794_v29  ;;  %v725_v31 = vsub.s32 2, %v1794_v29  ;;  %v721_v33 = vsub.s32 1, %v1794_v29  ;;  %v729_v34 = vsub.s32 3, %v1794_v29 }
  0xbf   : > { %v718_v35 = vrot.slane %v713_v32, %v717_v30  ;;  %v722_v36 = vrot.slane %v713_v32, %v721_v33  ;;  %v730_v37 = vrot.slane %v713_v32, %v729_v34  ;;  %v1532_v34 = vmov (!%p1809_p7), 0.0  }
  0xc0   : > { %1156 = vmatpush1.bf16.msra.mxu0 %v1155_v39 }
  0xc1   : > { %1158 = vmatprep.subr.bf16.mxu0 %v1157_v40 }
  0xc4   : > { %1160 = vmatpush1.bf16.msra.mxu0 %v1159_v45 }
  0xc5   : > { %1162 = vmatprep.subr.bf16.mxu0 %v1161_v46  ;;  %v1803_v46 = vand.u32 127, %v715_v28 }
  0xc7   : > { %vm741_vm1 = vcmp.lt.s32.totalorder %v1803_v46, 4  ;;  %vm809_vm9 = vcmp.lt.s32.totalorder (!%p1809_p7), %v1803_v46, 32 }
  0xc8   : > { %1164 = vmatpush1.bf16.msra.mxu0 %v1163_v51 }
  0xc9   : > { %1166 = vmatprep.subr.bf16.mxu0 %v1165_v52 }
  0xcc   : > { %1168 = vmatpush1.bf16.msra.mxu0 %v1167_v57 }
  0xcd   : > { %1170 = vmatprep.subr.bf16.mxu0 %v1169_v58 }
  0xd0   : > { %1172 = vmatpush1.bf16.msra.mxu0 %v1171_v61 }
 0x186   : > { %v417_v1 = vpop.f32.mrb[0].mxu0 }
 0x187   : > { %v1780_v3 = vadd.f32 %v972_v0, %v417_v1  ;;  %v1049_v5 = vpop.f32.mrb[1].mxu0 }
 0x189   : > { %566 = vmatmul.mubr.f32.vlgmr.msra.gmra.mrb[0].mxu1 %v1780_v3  ;;  %637 = vmatmul.mubr.f32.vlgmr.msra.gmra.mrb[2].mxu0 %v1780_v3 }
 0x18a   : > { %1175 = vmatpush3.bf16.msra.mxu1 %v1174_v2  ;;  %1082 = vmatprep.mubr.msk.f32.mxu1 %vm1530_vm0, %v1531_v7 }
 0x18b   : > { %1176 = vmatprep.subr.bf16.mxu1 %v1529_v4 }
 0x18e   : > { %1178 = vmatpush3.bf16.msra.mxu1 %v1177_v9 }
 0x18f   : > { %1179 = vmatprep.subr.bf16.mxu1 %v1529_v4 }
 0x192   : > { %1181 = vmatpush3.bf16.msra.mxu1 %v1180_v12 }
 0x193   : > { %1182 = vmatprep.subr.bf16.mxu1 %v1529_v4 }
 0x196   : > { %1184 = vmatpush3.bf16.msra.mxu1 %v1183_v15 }
 0x197   : > { %1185 = vmatprep.subr.bf16.mxu1 %v1529_v4 }
 0x19a   : > { %1187 = vmatpush3.bf16.msra.mxu1 %v1186_v18 }
 0x19b   : > { %1188 = vmatprep.subr.bf16.mxu1 %v1529_v4 }
 0x19e   : > { %1190 = vmatpush3.bf16.msra.mxu1 %v1189_v21  ;;  %v793_v21 = vstv %s1505_s25  ;;  %s975_s25 = sld [smem:[#allocation7 + $0x1]] (!%p1809_p7) }
 0x19f   : > { %1191 = vmatprep.subr.bf16.mxu1 %v1529_v4  ;;  %vm794_vm8 = vcmp.eq.s32.totalorder %v1794_v29, %v793_v21 }
 0x1a0   : > { %v973_v25 = vsel %vm794_vm8, 1.0, %v1531_v7  ;;  %v825_v7 = vstv (!%p1809_p7), %s824_s24 }
 0x1a1   : > { %vm826_vm12 = vcmp.eq.s32.totalorder (!%p1809_p7), %v1803_v46, %v825_v7 }
 0x1a2   : > { %1193 = vmatpush3.bf16.msra.mxu1 %v1192_v24 }
 0x1a3   : > { %1194 = vmatprep.subr.bf16.mxu1 %v1529_v4  ;;  %v726_v4 = vrot.slane %v713_v32, %v725_v31 }
 0x1a4   : > { %v830_v33 = vstv (!%p1809_p7), %s975_s25 }
 0x1a5   : > { %vm831_vm13 = vcmp.eq.s32.totalorder (!%p1809_p7), %v1803_v46, %v830_v33 }
 0x1a6   : > { %1196 = vmatpush3.bf16.msra.mxu1 %v1195_v27  ;;  %v797_v27 = vld [vmem:[#allocation2] sm:$0x3] }
 0x1a9   : > { %1083 = vmatmul.mubr.f32.vlgmr.msra.gmra.mrb[2].mxu1 %v1780_v3 }
 0x25c   : > { %v567_v38 = vpop.f32.mrb[0].mxu1  ;;  %v638_v39 = vpop.f32.mrb[2].mxu0 }
 0x25d   : > { %v735_v40 = vadd.f32 %v718_v35, %v567_v38  ;;  %v737_v41 = vadd.f32 %v726_v4, %v638_v39  ;;  %v569_v42 = vpop.f32.mrb[1].mxu1  ;;  %v640_v43 = vpop.f32.mrb[3].mxu0  ;;  %v974_v35 = vsel (!%p1809_p7), %vm826_vm12, 1.0, %v1532_v34  ;;  %v976_v4 = vsel (!%p1809_p7), %vm831_vm13, 1.0, %v1532_v34 }
 0x25e   : > { %v736_v44 = vadd.f32 %v722_v36, %v569_v42  ;;  %v738_v45 = vadd.f32 %v730_v37, %v640_v43  ;;  %v835_v36 = vsel (!%p1809_p7), %vm834_vm11, %v974_v35, %v976_v4 }
 0x27c   : > { %v709_v47 = vpop.f32.mrb[2].mxu1 }
 0x27d   : > { %v742_v48 = vsel %vm741_vm1, %v709_v47, -inf  ;;  %v1084_v49 = vpop.f32.mrb[3].mxu1 }
 0x27e   : > { %743 = vmax.xlane.f32.xlu0 %v742_v48 }
 0x30b   : > { %v744_v50 = vpop.xlane.xlu0 %743 }
 0x30c   : > { %v745_v51 = vsub.f32 %v742_v48, %v744_v50  ;;  %vm752_vm2 = vcmp.ge.f32.partialorder %v742_v48, %v744_v50 }
 0x30d   : > { %v753_v52 = vsel %vm752_vm2, %v1803_v46, 128 }
 0x30e   : > { %v746_v53 = vmul.f32 1.442695, %v745_v51  ;;  %v755_v54 = vshra.s32 %v753_v52, 16  ;;  %v754_v57 = vand.u32 65535, %v753_v52 }
 0x310   : > { %v757_v55 = vcvt.s32.f32 %v755_v54  ;;  %1318 = vpow2.f32 %v746_v53  ;;  %v756_v59 = vcvt.s32.f32 %v754_v57 }
 0x312   : > { %758 = vmin.xlane.f32.xlu0 %v757_v55 }
 0x31a   : > { %v1319_v56 = vpop.eup %1318 }
 0x31b   : > { %748 = vadd.xlane.f32.xlu1 %v1319_v56 }
 0x39f   : > { %v759_v58 = vpop.xlane.xlu0 %758 }
 0x3a0   : > { %vm760_vm3 = vcmp.eq.f32.partialorder %v757_v55, %v759_v58  ;;  %v765_v62 = vcvt.f32.s32 %v759_v58 }
 0x3a1   : > { %v761_v60 = vsel %vm760_vm3, %v756_v59, inf }
 0x3a2   : > { %762 = vmin.xlane.f32.xlu1 %v761_v60  ;;  %v766_v0 = vshll.u32 %v765_v62, 16 }
 0x3a8   : > { %v749_v61 = vpop.xlane.xlu1 %748 }
 0x3a9   : > { %1320 = vrcp.f32 %v749_v61 }
 0x3b3   : > { %v1321_v5 = vpop.eup %1320 }
 0x42f   : > { %v763_v63 = vpop.xlane.xlu1 %762 }
 0x430   : > { %v764_v1 = vcvt.f32.s32 %v763_v63 }
 0x432   : > { %v767_v2 = vadd.s32 %v766_v0, %v764_v1 }
 0x434   : > { %vm768_vm4 = vcmp.eq.s32.totalorder %v767_v2, 0  ;;  %vm772_vm5 = vcmp.eq.s32.totalorder %v767_v2, 1  ;;  %vm776_vm6 = vcmp.eq.s32.totalorder %v767_v2, 2  ;;  %vm780_vm7 = vcmp.eq.s32.totalorder %v767_v2, 3 }
 0x435   : > { %v769_v6 = vsel %vm768_vm4, %v1321_v5, 0.0  ;;  %v773_v8 = vsel %vm772_vm5, %v1321_v5, 0.0  ;;  %v777_v9 = vsel %vm776_vm6, %v1321_v5, 0.0  ;;  %v781_v10 = vsel %vm780_vm7, %v1321_v5, 0.0 }
 0x436   : > { %v770_v11 = vmul.f32 %v769_v6, %v735_v40  ;;  %v774_v12 = vmul.f32 %v773_v8, %v736_v44  ;;  %v778_v13 = vmul.f32 %v777_v9, %v737_v41  ;;  %v782_v14 = vmul.f32 %v781_v10, %v738_v45 }
 0x438   : > { %v775_v15 = vadd.f32 %v774_v12, %v770_v11 }
 0x43a   : > { %v779_v16 = vadd.f32 %v778_v13, %v775_v15 }
 0x43c   : > { %v783_v17 = vadd.f32 %v782_v14, %v779_v16 }
 0x43e   : > { %v784_v18 = vadd.f32 %v783_v17, %v1780_v3 }
 0x440   : > { %v785_v19 = vrot.slane %v784_v18, 4 }
 0x442   : > { %v786_v20 = vadd.f32 %v785_v19, %v784_v18 }
 0x444   : > { %v787_v22 = vrot.slane %v786_v20, 2 }
 0x446   : > { %v788_v23 = vadd.f32 %v787_v22, %v786_v20 }
 0x448   : > { %v789_v24 = vrot.slane %v788_v23, 1 }
 0x44a   : > { %v790_v26 = vadd.f32 %v789_v24, %v788_v23  ;;  %806 = sbr.rel (%p1809_p7) target bundleno = 1641 (0x669), region = 68 }
 0x44c   : > { %v798_v28 = vmul.f32 %v973_v25, %v790_v26 }
 0x44e   : > { %v799_v30 = vadd.f32 %v798_v28, %v797_v27 }
 0x450   : > { %800 = vst [vmem:[#allocation2] sm:$0x3] %v799_v30 }
 0x457   : > { %v807_v31 = vld [vmem:[#allocation2] sm:$0x3] }
 0x458   : > { %v808_v3 = vmul.f32 0.0625, %v807_v31 }
 0x45a   : > { %v810_v32 = vsel %vm809_vm9, %v808_v3, -inf  ;;  %v836_v37 = vmul.f32 %v835_v36, %v808_v3 }
 0x45b   : > { %v812_v29 = vsel %vm811_vm10, %v810_v32, -inf }
 0x45c   : > { %813 = vmax.xlane.f32.xlu0 %v812_v29  ;;  %v837_v38 = vsel %vm811_vm10, %v836_v37, 0.0 }
 0x45d   : > { %838 = vadd.xlane.f32.xlu1 %v837_v38 }
 0x4e9   : > { %v814_v39 = vpop.xlane.xlu0 %813 }
 0x4ea   : > { %v815_v40 = vsub.f32 %v810_v32, %v814_v39  ;;  %v839_v47 = vpop.xlane.xlu1 %838 }
 0x4ec   : > { %v816_v41 = vmul.f32 1.442695, %v815_v40 }
 0x4ee   : > { %1322 = vpow2.f32 %v816_v41 }
 0x4f8   : > { %v1323_v42 = vpop.eup %1322 }
 0x4f9   : > { %v818_v43 = vsel %vm811_vm10, %v1323_v42, 0.0 }
 0x4fa   : > { %819 = vadd.xlane.f32.xlu0 %v818_v43 }
 0x587   : > { %v820_v44 = vpop.xlane.xlu0 %819 }
 0x588   : > { %1324 = vlog2.f32 %v820_v44 }
 0x592   : > { %v1325_v45 = vpop.eup %1324 }
 0x593   : > { %v822_v46 = vmul.f32 0.6931472, %v1325_v45 }
 0x595   : > { %v823_v48 = vadd.f32 %v822_v46, %v814_v39 }
 0x597   : > { %v840_v49 = vsub.f32 %v823_v48, %v839_v47 }
 0x599   : > { %v842_v50 = vsel %vm841_vm14, %v840_v49, 0.0 }
 0x59a   : > { %843 = vadd.xlane.f32.xlu1 %v842_v50 }
 0x627   : > { %v844_v51 = vpop.xlane.xlu1 %843 }
 0x628   : > { %v845_v52 = vrot.slane %v844_v51, 4 }
 0x62a   : > { %v846_v53 = vadd.f32 %v845_v52, %v844_v51 }
 0x62c   : > { %v847_v54 = vrot.slane %v846_v53, 2 }
 0x62e   : > { %v848_v55 = vadd.f32 %v847_v54, %v846_v53 }
 0x630   : > { %v849_v56 = vrot.slane %v848_v55, 1 }
 0x632   : > { %v850_v57 = vadd.f32 %v849_v56, %v848_v55 }
 0x634   : > { %1197 = vpush %v850_v57 }
 0x665   : > { %s1198_s9 = spop %1197 }
 0x666   : > { %s852_s21 = smul.f32 0.5, %s1198_s9 }
 0x668   : > { %854 = sst [smem:[#allocation11]] %s852_s21 }
 0x669 PF: > { %s1889_s16 = sadd.s32 4294967295, %s1517_s28   ;;  %s1427_s29 = scalar_lea.hbm %s1869_s6, 16 }
 0x66a   : > { %p1238_p6 = scmp.eq.s32.totalorder %s1889_s16, 3  ;;  %p1428_p10 = scmp.ne.s32.totalorder %s1869_s6, %s1427_s29 }
 0x66b   : > { %p1433_p4 = scmp.lt.u32.totalorder %s1427_s29, %s1869_s6 }
 0x66c   : > { %p1429_p12 = pnand %p1428_p10, %p1238_p6 }
 0x66e   : > { %p1430_p1 = pneg %p1429_p12 }
 0x670   : > { %p1435_p13 = pnand %p1433_p4, %p1430_p1 }
 0x672   : > { %1438 = shalt.err (!%p1435_p13)
}
 0x673   : > { %s1533_s1 = smov [#allocation11]  }
 0x674   : > { %1214 = dma.smem_to_hbm (%p1238_p6), %s1533_s1, 16, %s1869_s6, [#allocation5]  }
 0x675   : > { %1484 = dma.done.wait (%p1238_p6), [#allocation5], 16  }
 0x676   : > { %1486 = vsyncadd (%p1238_p6), [#allocation5], 4294967280 }
 0x677   : > { %868 = sfence }
 0x678 PF: > { %s22_s28 = sadd.s32 1, %s1517_s28   ;;  %s1890_s21 = smov %s1493_s22 }
 0x679   : > { %p19_p11 = scmp.ge.s32.totalorder %s22_s28, 6   ;;  %s1891_s22 = smov %s1497_s23 }
 0x67a   : > { %s1892_s23 = smov %s1713_s17  ;;  %s1893_s24 = smov %s1509_s26 }
 0x67b   : > { %s1894_s25 = smov %s1513_s27  ;;  %s1895_s26 = smov %s1898_s12 }
 0x67c   : > { %s1896_s27 = smov %s1902_s13  ;;  %21 = sbr.rel (!%p19_p11) target bundleno = 11 (0xb), region = 104 }
 0x683   :  { %874 = vsyncpa [#allocation4], 1 }
 0x684   :  { %876 = vsyncpa [#allocation4 + $0x1], 1 }
 0x685   :  { %877 = vsyncpa [#allocation9], 1 }
 0x686   :  { %878 = vsyncpa [#allocation5], 1 }
 0x687   :  { %880 = vsyncpa [#allocation5 + $0x1], 1 }
 0x688   :  { %881 = vsyncpa [#allocation6], 1 }
 0x689   :  { %883 = vsyncpa [#allocation6 + $0x1], 1 }

</bundles_post_ra>
